<compile_context>
chip_gen: v7x
topology: tpu7x:2x2x1
jax: 0.10.0
libtpu: 0.0.40
codegen_flags: <defaults>
</compile_context>

<pallas_src>
import functools

import jax
import jax.numpy as jnp
from jax.experimental import pallas as pl
from jax.experimental.pallas import tpu as pltpu

N_EMBED = 128
HIDDEN = 4 * N_EMBED
DROPOUT_P = 0.2


def ffn_kernel(seed_ref, x_ref, w1_ref, b1_ref, w2_ref, b2_ref, o_ref,
               *, p, training, tile_m):
    # Hot path: two MXU matmuls + VPU relu (+ optional dropout), all in VMEM.
    x = x_ref[...]
    h = jnp.dot(x, w1_ref[...], preferred_element_type=jnp.float32) + b1_ref[...]
    h = jnp.maximum(h, 0.0)
    y = jnp.dot(h, w2_ref[...], preferred_element_type=jnp.float32) + b2_ref[...]

    if training and p > 0.0:
        # Inverted dropout with a stateless counter-based hash RNG:
        # deterministic per (seed, global element index), independent of grid
        # scheduling -> safe with dimension_semantics=("parallel",).
        n_cols = y.shape[-1]
        rows = jax.lax.broadcasted_iota(jnp.int32, y.shape, 0)
        cols = jax.lax.broadcasted_iota(jnp.int32, y.shape, 1)
        gidx = (pl.program_id(0) * tile_m + rows) * n_cols + cols
        bits = gidx.astype(jnp.uint32) + (
            seed_ref[0].astype(jnp.uint32) * jnp.uint32(0x9E3779B9))
        # murmur3-style finalizer (VPU int ops only; hidden under the MXU work)
        bits = bits ^ (bits >> 16)
        bits = bits * jnp.uint32(0x7FEB352D)
        bits = bits ^ (bits >> 15)
        bits = bits * jnp.uint32(0x846CA68B)
        bits = bits ^ (bits >> 16)
        # keep-probability = 1 - p, decided entirely in the integer domain
        thresh = jnp.uint32(min(max(int(p * (2.0 ** 32)), 0), 2 ** 32 - 1))
        keep = bits >= thresh
        y = jnp.where(keep, y * jnp.float32(1.0 / (1.0 - p)), 0.0)

    o_ref[...] = y.astype(o_ref.dtype)


def feed_forward(x, w1, b1, w2, b2, *, seed=0, training=True, p=DROPOUT_P,
                 tile_m=512):
    """x: [..., n_embed] float32 -> [..., n_embed] float32."""
    orig_shape = x.shape
    n_embed = orig_shape[-1]
    hidden = w1.shape[1]
    xm = x.reshape(-1, n_embed)
    m = xm.shape[0]

    # Shrink the tile for small inputs (sublane-aligned), so tiny batches
    # don't pay for a full 512-row matmul; then pad rows up to a multiple of
    # the tile (padding is sliced off below).
    m_aligned = ((m + 7) // 8) * 8
    tile_m = max(8, min(tile_m, m_aligned))
    num_tiles = pl.cdiv(m, tile_m)
    m_pad = num_tiles * tile_m
    if m_pad != m:
        xm = jnp.pad(xm, ((0, m_pad - m), (0, 0)))

    seed_arr = jnp.array([seed], dtype=jnp.int32)
    b1_2d = b1.reshape(1, hidden)
    b2_2d = b2.reshape(1, n_embed)

    # TODO(synk): for MXU-bound shapes, casting x/w1/w2 to bfloat16 (keeping
    # f32 accumulation + f32 bias/relu/dropout) gives ~3x matmul throughput on
    # v6e/v7x; kept f32 here for exact parity with the f32 reference.
    kernel = functools.partial(ffn_kernel, p=float(p), training=bool(training),
                               tile_m=tile_m)

    out = pl.pallas_call(
        kernel,
        out_shape=jax.ShapeDtypeStruct((m_pad, n_embed), jnp.float32),
        grid_spec=pltpu.PrefetchScalarGridSpec(
            num_scalar_prefetch=1,
            grid=(num_tiles,),
            in_specs=[
                pl.BlockSpec((tile_m, n_embed), lambda i, seed: (i, 0)),
                # constant block index -> fetched once, stays resident in VMEM
                pl.BlockSpec((n_embed, hidden), lambda i, seed: (0, 0)),
                pl.BlockSpec((1, hidden), lambda i, seed: (0, 0)),
                pl.BlockSpec((hidden, n_embed), lambda i, seed: (0, 0)),
                pl.BlockSpec((1, n_embed), lambda i, seed: (0, 0)),
            ],
            out_specs=pl.BlockSpec((tile_m, n_embed), lambda i, seed: (i, 0)),
        ),
        compiler_params=pltpu.CompilerParams(
            # row tiles are fully independent (RNG is element-index based),
            # so let megacore (v7x: 2 TCs) shard the grid axis.
            dimension_semantics=("parallel",),
            vmem_limit_bytes=64 * 1024 * 1024),
    )(seed_arr, xm, w1, b1_2d, w2, b2_2d)

    if m_pad != m:
        out = out[:m]
    return out.reshape(orig_shape)


if __name__ == "__main__":
    key = jax.random.PRNGKey(0)
    kx, kw1, kb1, kw2, kb2 = jax.random.split(key, 5)

    B, T = 2, 8  # small shapes; n_embed fixed at 128 by the module
    x = jax.random.normal(kx, (B, T, N_EMBED), dtype=jnp.float32)

    # deterministic parameter init (PyTorch-style uniform fan-in bounds)
    bound1 = 1.0 / (N_EMBED ** 0.5)
    bound2 = 1.0 / (HIDDEN ** 0.5)
    w1 = jax.random.uniform(kw1, (N_EMBED, HIDDEN), jnp.float32, -bound1, bound1)
    b1 = jax.random.uniform(kb1, (HIDDEN,), jnp.float32, -bound1, bound1)
    w2 = jax.random.uniform(kw2, (HIDDEN, N_EMBED), jnp.float32, -bound2, bound2)
    b2 = jax.random.uniform(kb2, (N_EMBED,), jnp.float32, -bound2, bound2)

    # correctness check in eval mode (dropout = identity) against plain JAX
    y_eval = feed_forward(x, w1, b1, w2, b2, training=False)
    y_ref = jnp.maximum(x @ w1 + b1, 0.0) @ w2 + b2
    assert jnp.allclose(y_eval, y_ref, atol=1e-4, rtol=1e-4), "eval-mode mismatch"

    # training mode (matches PyTorch module default: dropout active).
    # TODO(synk): PyTorch's dropout RNG stream cannot be reproduced bit-exactly;
    # the kernel uses a deterministic counter-based hash RNG with a fixed seed.
    y_train = feed_forward(x, w1, b1, w2, b2, seed=0, training=True)
    jax.block_until_ready(y_train)
    assert y_train.shape == x.shape
    drop_frac = float(jnp.mean((y_train == 0.0).astype(jnp.float32)))
    assert 0.05 < drop_frac < 0.35, f"dropout fraction looks wrong: {drop_frac}"

    print("KERNEL_OK")
</pallas_src>

<mosaic_0001>
module attributes {stable_mosaic.version = 11 : i64} {
  func.func @ffn_kernel(%arg0: i32, %arg1: memref<1xi32, #tpu.memory_space<smem>>, %arg2: memref<16x128xf32, #tpu.memory_space<vmem>>, %arg3: memref<128x512xf32, #tpu.memory_space<vmem>>, %arg4: memref<1x512xf32, #tpu.memory_space<vmem>>, %arg5: memref<512x128xf32, #tpu.memory_space<vmem>>, %arg6: memref<1x128xf32, #tpu.memory_space<vmem>>, %arg7: memref<16x128xf32, #tpu.memory_space<vmem>>) attributes {dimension_semantics = [#tpu.dimension_semantics<parallel>], iteration_bounds = array<i64: 1>, scalar_prefetch = 1 : i64, scratch_operands = 0 : i64, tpu.core_type = #tpu.core_type<tc>, window_params = [{transform_indices = @transform_0, window_bounds = array<i64: 16, 128>}, {pipeline_mode = #tpu.pipeline_mode<synchronous>, transform_indices = @transform_1, window_bounds = array<i64: 128, 512>}, {pipeline_mode = #tpu.pipeline_mode<synchronous>, transform_indices = @transform_2, window_bounds = array<i64: 1, 512>}, {pipeline_mode = #tpu.pipeline_mode<synchronous>, transform_indices = @transform_3, window_bounds = array<i64: 512, 128>}, {pipeline_mode = #tpu.pipeline_mode<synchronous>, transform_indices = @transform_4, window_bounds = array<i64: 1, 128>}, {transform_indices = @transform_5, window_bounds = array<i64: 16, 128>}]} {
    %c0 = arith.constant 0 : index
    %c0_0 = arith.constant 0 : index
    %0 = vector.load %arg2[%c0, %c0_0] : memref<16x128xf32, #tpu.memory_space<vmem>>, vector<16x128xf32>
    %c0_1 = arith.constant 0 : index
    %c0_2 = arith.constant 0 : index
    %1 = vector.load %arg3[%c0_1, %c0_2] : memref<128x512xf32, #tpu.memory_space<vmem>>, vector<128x512xf32>
    %cst = arith.constant dense<0.000000e+00> : vector<16x512xf32>
    %2 = tpu.matmul %0, %1, %cst {dimension_numbers = #tpu.dot_dimension_numbers<[1], [0], [0], [1], [0, 0, 1, 1], [], []>} : vector<16x128xf32>, vector<128x512xf32>, vector<16x512xf32> -> vector<16x512xf32>
    %c0_3 = arith.constant 0 : index
    %c0_4 = arith.constant 0 : index
    %3 = vector.load %arg4[%c0_3, %c0_4] : memref<1x512xf32, #tpu.memory_space<vmem>>, vector<1x512xf32>
    %4 = vector.broadcast %3 : vector<1x512xf32> to vector<16x512xf32>
    %5 = arith.addf %2, %4 : vector<16x512xf32>
    %cst_5 = arith.constant 0.000000e+00 : f32
    %6 = vector.broadcast %cst_5 : f32 to vector<16x512xf32>
    %7 = arith.maximumf %5, %6 : vector<16x512xf32>
    %c0_6 = arith.constant 0 : index
    %c0_7 = arith.constant 0 : index
    %8 = vector.load %arg5[%c0_6, %c0_7] : memref<512x128xf32, #tpu.memory_space<vmem>>, vector<512x128xf32>
    %cst_8 = arith.constant dense<0.000000e+00> : vector<16x128xf32>
    %9 = tpu.matmul %7, %8, %cst_8 {dimension_numbers = #tpu.dot_dimension_numbers<[1], [0], [0], [1], [0, 0, 1, 1], [], []>} : vector<16x512xf32>, vector<512x128xf32>, vector<16x128xf32> -> vector<16x128xf32>
    %c0_9 = arith.constant 0 : index
    %c0_10 = arith.constant 0 : index
    %10 = vector.load %arg6[%c0_9, %c0_10] : memref<1x128xf32, #tpu.memory_space<vmem>>, vector<1x128xf32>
    %11 = vector.broadcast %10 : vector<1x128xf32> to vector<16x128xf32>
    %12 = arith.addf %9, %11 : vector<16x128xf32>
    %c0_11 = arith.constant 0 : index
    %c0_12 = arith.constant 0 : index
    %13 = vector.load %arg7[%c0_11, %c0_12] : memref<16x128xf32, #tpu.memory_space<vmem>>, vector<16x128xf32>
    tpu.vector_store %arg7[%c0_11, %c0_12], %12 {strides = array<i32>} : memref<16x128xf32, #tpu.memory_space<vmem>>, vector<16x128xf32>,
    return
  }
  func.func @transform_0(%arg0: i32, %arg1: memref<1xi32, #tpu.memory_space<smem>>) -> (i32, i32) {
    %c0_i32 = arith.constant 0 : i32
    %c0_i32_0 = arith.constant 0 : i32
    return %arg0, %c0_i32 : i32, i32
  }
  func.func @transform_1(%arg0: i32, %arg1: memref<1xi32, #tpu.memory_space<smem>>) -> (i32, i32) {
    %c0_i32 = arith.constant 0 : i32
    %c0_i32_0 = arith.constant 0 : i32
    %c0_i32_1 = arith.constant 0 : i32
    return %c0_i32, %c0_i32_0 : i32, i32
  }
  func.func @transform_2(%arg0: i32, %arg1: memref<1xi32, #tpu.memory_space<smem>>) -> (i32, i32) {
    %c0_i32 = arith.constant 0 : i32
    %c0_i32_0 = arith.constant 0 : i32
    %c0_i32_1 = arith.constant 0 : i32
    return %c0_i32, %c0_i32_0 : i32, i32
  }
  func.func @transform_3(%arg0: i32, %arg1: memref<1xi32, #tpu.memory_space<smem>>) -> (i32, i32) {
    %c0_i32 = arith.constant 0 : i32
    %c0_i32_0 = arith.constant 0 : i32
    %c0_i32_1 = arith.constant 0 : i32
    return %c0_i32, %c0_i32_0 : i32, i32
  }
  func.func @transform_4(%arg0: i32, %arg1: memref<1xi32, #tpu.memory_space<smem>>) -> (i32, i32) {
    %c0_i32 = arith.constant 0 : i32
    %c0_i32_0 = arith.constant 0 : i32
    %c0_i32_1 = arith.constant 0 : i32
    return %c0_i32, %c0_i32_0 : i32, i32
  }
  func.func @transform_5(%arg0: i32, %arg1: memref<1xi32, #tpu.memory_space<smem>>) -> (i32, i32) {
    %c0_i32 = arith.constant 0 : i32
    %c0_i32_0 = arith.constant 0 : i32
    return %arg0, %c0_i32 : i32, i32
  }
}

</mosaic_0001>

<bundles_post_ra>
// kernel: tpu_custom_call.1
= control target key start
LH: loop header
LB: loop body
LE: loop exit
PB: predicated region body
PF: predicated region fallthrough
CT: control target
= control target key end

     0   :  { %12 = vsyncpa [#allocation5], 0  ;;  %s1066_s0 = inlined_call_operand.<no memory space> [shape: s32[1], index: 0, kind: input, shape index: {}]   ;;  %s1067_s1 = inlined_call_operand.hbm [shape: f32[16,128], index: 1, kind: input, shape index: {}]   ;;  %s1068_s2 = inlined_call_operand.hbm [shape: f32[128,512], index: 2, kind: input, shape index: {}]   ;;  %s1069_s3 = inlined_call_operand.hbm [shape: f32[1,512], index: 3, kind: input, shape index: {}]   ;;  %s1070_s4 = inlined_call_operand.hbm [shape: f32[512,128], index: 4, kind: input, shape index: {}]   ;;  %s1071_s5 = inlined_call_operand.hbm [shape: f32[1,128], index: 5, kind: input, shape index: {}]   ;;  %s1072_s6 = inlined_call_operand.hbm [shape: f32[16,128], index: 6, kind: output, shape index: {}]  }
   0x1   :  { %13 = vsyncpa [#allocation8], 0 }
   0x2   :  { %14 = vsyncpa [#allocation11], 0 }
   0x3   :  { %15 = vsyncpa [#allocation6], 0  ;;  %s935_s0 = smov [#allocation7]   ;;  %s795_s24 = scalar_lea.hbm %s1068_s2, 8192 }
   0x4   :  { %s33_s21 = sshll.u32 %s935_s0, 4  ;;  %p796_p0 = scmp.ne.s32.totalorder %s1068_s2, %s795_s24  ;;  %s34_s21 = int_to_ptr.vmem [resolvable:$true] %s33_s21 }
   0x5   :  { %p799_p1 = scmp.lt.u32.totalorder %s795_s24, %s1068_s2 }
   0x7   :  { %p801_p2 = pnand %p799_p1, %p796_p0 }
   0x9   :  { %804 = shalt.err (!%p801_p2)
}
   0xa   :  { %s805_s29 = scalar_lea.vmem %s34_s21, 8192  ;;  %p810_p4 = scmp.lt.s32.totalorder %s34_s21, %s34_s21 }
   0xb   :  { %p806_p3 = scmp.ne.s32.totalorder %s34_s21, %s805_s29  ;;  %p811_p5 = scmp.lt.s32.totalorder %s805_s29, %s805_s29 }
   0xd   :  { %p812_p6 = por %p811_p5, %p810_p4 }
   0xf   :  { %p813_p7 = pnand %p812_p6, %p806_p3 }
  0x11   :  { %816 = shalt.err (!%p813_p7)
}
  0x12   :  { %s936_s30 = smov 512   ;;  %s937_s7 = smov 32  }
  0x13   :  { %39 = dma.hbm_to_vmem [thread:$0]  %s1068_s2, 8192, %s34_s21, [#allocation8], %s936_s30, %s936_s30, %s937_s7  }
  0x14   :  { %s938_s10 = smov [#allocation10]   ;;  %s939_s12 = smov [#allocation4]  }
  0x15   :  { %s55_s11 = sshll.u32 %s938_s10, 4  ;;  %s21_s13 = sshll.u32 %s939_s12, 4  ;;  %s56_s11 = int_to_ptr.vmem [resolvable:$true] %s55_s11  ;;  %s22_s13 = int_to_ptr.vmem [resolvable:$true] %s21_s13 }
  0x16   :  { %s817_s16 = scalar_lea.hbm %s1070_s4, 8192 }
  0x17   :  { %p818_p8 = scmp.ne.s32.totalorder %s1070_s4, %s817_s16  ;;  %p821_p9 = scmp.lt.u32.totalorder %s817_s16, %s1070_s4 }
  0x19   :  { %p823_p10 = pnand %p821_p9, %p818_p8 }
  0x1b   :  { %826 = shalt.err (!%p823_p10)
}
  0x1c   :  { %s827_s2 = scalar_lea.vmem %s56_s11, 8192  ;;  %p832_p12 = scmp.lt.s32.totalorder %s56_s11, %s56_s11 }
  0x1d   :  { %p828_p11 = scmp.ne.s32.totalorder %s56_s11, %s827_s2  ;;  %p833_p13 = scmp.lt.s32.totalorder %s827_s2, %s827_s2 }
  0x1f   :  { %p834_p0 = por %p833_p13, %p832_p12 }
  0x21   :  { %p835_p1 = pnand %p834_p0, %p828_p11 }
  0x23   :  { %838 = shalt.err (!%p835_p1)
}
  0x24   :  { %s940_s0 = smov 128   ;;  %s941_s21 = smov 8  }
  0x25   :  { %61 = dma.hbm_to_vmem [thread:$0]  %s1070_s4, 8192, %s56_s11, [#allocation11], %s940_s0, %s940_s0, %s941_s21  }
  0x26   :  { %s839_s26 = scalar_lea.hbm %s1067_s1, 256 }
  0x27   :  { %p840_p2 = scmp.ne.s32.totalorder %s1067_s1, %s839_s26  ;;  %p843_p3 = scmp.lt.u32.totalorder %s839_s26, %s1067_s1 }
  0x29   :  { %p845_p4 = pnand %p843_p3, %p840_p2 }
  0x2b   :  { %848 = shalt.err (!%p845_p4)
}
  0x2c   :  { %s849_s7 = scalar_lea.vmem %s22_s13, 256  ;;  %p854_p6 = scmp.lt.s32.totalorder %s22_s13, %s22_s13 }
  0x2d   :  { %p850_p5 = scmp.ne.s32.totalorder %s22_s13, %s849_s7  ;;  %p855_p7 = scmp.lt.s32.totalorder %s849_s7, %s849_s7 }
  0x2f   :  { %p856_p8 = por %p855_p7, %p854_p6 }
  0x31   :  { %p857_p9 = pnand %p856_p8, %p850_p5 }
  0x33   :  { %860 = shalt.err (!%p857_p9)
}
  0x34   :  { %27 = dma.hbm_to_vmem [thread:$0]  %s1067_s1, 256, %s22_s13, [#allocation5], %s940_s0, %s940_s0, %s941_s21  }
  0x35   :  { %s942_s9 = smov [#allocation9]   ;;  %s943_s11 = smov [#allocation12]  }
  0x36   :  { %s46_s10 = sshll.u32 %s942_s9, 4  ;;  %s68_s12 = sshll.u32 %s943_s11, 4  ;;  %s47_s10 = int_to_ptr.vmem [resolvable:$true] %s46_s10  ;;  %s69_s12 = int_to_ptr.vmem [resolvable:$true] %s68_s12 }
  0x37   :  { %s861_s16 = scalar_lea.hbm %s1069_s3, 64 }
  0x38   :  { %p862_p10 = scmp.ne.s32.totalorder %s1069_s3, %s861_s16  ;;  %p865_p11 = scmp.lt.u32.totalorder %s861_s16, %s1069_s3 }
  0x3a   :  { %p867_p12 = pnand %p865_p11, %p862_p10 }
  0x3c   :  { %870 = shalt.err (!%p867_p12)
}
  0x3d   :  { %s871_s1 = scalar_lea.vmem %s47_s10, 64  ;;  %p876_p0 = scmp.lt.s32.totalorder %s47_s10, %s47_s10 }
  0x3e   :  { %p872_p13 = scmp.ne.s32.totalorder %s47_s10, %s871_s1  ;;  %p877_p1 = scmp.lt.s32.totalorder %s871_s1, %s871_s1 }
  0x40   :  { %p878_p2 = por %p877_p1, %p876_p0 }
  0x42   :  { %p879_p3 = pnand %p878_p2, %p872_p13 }
  0x44   :  { %882 = shalt.err (!%p879_p3)
}
  0x45   :  { %49 = dma.hbm_to_vmem [thread:$0]  %s1069_s3, 64, %s47_s10, [#allocation8]  }
  0x46   :  { %s883_s24 = scalar_lea.hbm %s1071_s5, 16 }
  0x47   :  { %p884_p4 = scmp.ne.s32.totalorder %s1071_s5, %s883_s24  ;;  %p887_p5 = scmp.lt.u32.totalorder %s883_s24, %s1071_s5 }
  0x49   :  { %p889_p6 = pnand %p887_p5, %p884_p4 }
  0x4b   :  { %892 = shalt.err (!%p889_p6)
}
  0x4c   :  { %s893_s29 = scalar_lea.vmem %s69_s12, 16  ;;  %s897_s30 = scalar_lea.vmem %s69_s12, 32 }
  0x4d   :  { %p894_p7 = scmp.ne.s32.totalorder %s69_s12, %s893_s29  ;;  %p898_p8 = scmp.lt.s32.totalorder %s69_s12, %s69_s12 }
  0x4e   :  { %p899_p9 = scmp.lt.s32.totalorder %s897_s30, %s893_s29 }
  0x50   :  { %p900_p10 = por %p899_p9, %p898_p8 }
  0x52   :  { %p901_p11 = pnand %p900_p10, %p894_p7 }
  0x54   :  { %904 = shalt.err (!%p901_p11)
}
  0x55   :  { %71 = dma.hbm_to_vmem [thread:$0]  %s1071_s5, 16, %s69_s12, [#allocation11]  }
  0x56   :  { %927 = dma.done.wait [#allocation5], 256  }
  0x57   :  { %928 = vsyncadd [#allocation5], 4294967040 }
  0x58   :  { %929 = dma.done.wait [#allocation8], 8256  }
  0x59   :  { %930 = vsyncadd [#allocation8], 4294959040 }
  0x5a   :  { %931 = dma.done.wait [#allocation11], 8208  }
  0x5b   :  { %932 = vsyncadd [#allocation11], 4294959088  ;;  %v944_v0 = vmov 0.0   ;;  %v90_v1 = vld [vmem:[#allocation7 + $0x8] sm:$0xff]  ;;  %v92_v3 = vld [vmem:[#allocation7 + $0x18] sm:$0xff]  ;;  %s945_s5 = smov [#allocation13]  }
  0x5c   :  { %239 = vmatprep.mubr.f32.mxu0 %v944_v0  ;;  %316 = vmatprep.mubr.f32.mxu1 %v944_v0  ;;  %v94_v2 = vld [vmem:[#allocation7 + $0x28] sm:$0xff]  ;;  %v96_v5 = vld [vmem:[#allocation7 + $0x38] sm:$0xff]  ;;  %v89_v6 = vld [vmem:[#allocation7] sm:$0xff]  ;;  %s565_s4 = sshll.u32 %s945_s5, 4  ;;  %s566_s4 = int_to_ptr.vmem [resolvable:$true] %s565_s4 }
  0x5d   :  { %v656_v4 = vpack.c.bf16 %v94_v2, %v90_v1  ;;  %v93_v7 = vld [vmem:[#allocation7 + $0x20] sm:$0xff]  ;;  %v688_v8 = vpack.c.bf16 %v96_v5, %v92_v3  ;;  %v91_v10 = vld [vmem:[#allocation7 + $0x10] sm:$0xff]  ;;  %v98_v12 = vld [vmem:[#allocation7 + $0x48] sm:$0xff]  ;;  %s905_s8 = scalar_lea.vmem %s566_s4, 256  ;;  %p910_p13 = scmp.lt.s32.totalorder %s566_s4, %s566_s4 }
  0x5e   :  { %v658_v9 = vpack.c.bf16 %v93_v7, %v89_v6  ;;  %v95_v11 = vld [vmem:[#allocation7 + $0x30] sm:$0xff]  ;;  %v102_v14 = vld [vmem:[#allocation7 + $0x68] sm:$0xff]  ;;  %v100_v15 = vld [vmem:[#allocation7 + $0x58] sm:$0xff]  ;;  %p906_p12 = scmp.ne.s32.totalorder %s566_s4, %s905_s8  ;;  %p911_p0 = scmp.lt.s32.totalorder %s905_s8, %s905_s8 }
  0x5f   :  { %657 = vmatprep.subr.bf16.mxu0 %v656_v4  ;;  %v690_v13 = vpack.c.bf16 %v95_v11, %v91_v10  ;;  %v104_v16 = vld [vmem:[#allocation7 + $0x78] sm:$0xff]  ;;  %689 = vmatprep.subr.bf16.mxu1 %v688_v8  ;;  %v660_v17 = vpack.c.bf16 %v102_v14, %v98_v12  ;;  %v97_v19 = vld [vmem:[#allocation7 + $0x40] sm:$0xff]  ;;  %v99_v21 = vld [vmem:[#allocation7 + $0x50] sm:$0xff] }
  0x60   :  { %659 = vmatpush1.bf16.msra.mxu0 %v658_v9  ;;  %v692_v18 = vpack.c.bf16 %v104_v16, %v100_v15  ;;  %v101_v20 = vld [vmem:[#allocation7 + $0x60] sm:$0xff]  ;;  %v103_v23 = vld [vmem:[#allocation7 + $0x70] sm:$0xff]  ;;  %v106_v24 = vld [vmem:[#allocation7 + $0x88] sm:$0xff]  ;;  %p912_p1 = por %p911_p0, %p910_p13 }
  0x61   :  { %691 = vmatpush1.bf16.msra.mxu1 %v690_v13  ;;  %v662_v22 = vpack.c.bf16 %v101_v20, %v97_v19  ;;  %v110_v25 = vld [vmem:[#allocation7 + $0xa8] sm:$0xff]  ;;  %661 = vmatprep.subr.bf16.mxu0 %v660_v17  ;;  %v694_v26 = vpack.c.bf16 %v103_v23, %v99_v21  ;;  %v108_v28 = vld [vmem:[#allocation7 + $0x98] sm:$0xff]  ;;  %v105_v30 = vld [vmem:[#allocation7 + $0x80] sm:$0xff] }
  0x62   :  { %693 = vmatprep.subr.bf16.mxu1 %v692_v18  ;;  %v664_v27 = vpack.c.bf16 %v110_v25, %v106_v24  ;;  %v112_v29 = vld [vmem:[#allocation7 + $0xb8] sm:$0xff]  ;;  %v109_v32 = vld [vmem:[#allocation7 + $0xa0] sm:$0xff]  ;;  %v107_v33 = vld [vmem:[#allocation7 + $0x90] sm:$0xff]  ;;  %p913_p2 = pnand %p912_p1, %p906_p12 }
  0x63   :  { %v696_v31 = vpack.c.bf16 %v112_v29, %v108_v28  ;;  %v111_v34 = vld [vmem:[#allocation7 + $0xb0] sm:$0xff]  ;;  %v666_v35 = vpack.c.bf16 %v109_v32, %v105_v30  ;;  %v114_v36 = vld [vmem:[#allocation7 + $0xc8] sm:$0xff]  ;;  %v116_v38 = vld [vmem:[#allocation7 + $0xd8] sm:$0xff] }
  0x64   :  { %663 = vmatpush1.bf16.msra.mxu0 %v662_v22  ;;  %v118_v37 = vld [vmem:[#allocation7 + $0xe8] sm:$0xff]  ;;  %v698_v39 = vpack.c.bf16 %v111_v34, %v107_v33  ;;  %v120_v41 = vld [vmem:[#allocation7 + $0xf8] sm:$0xff]  ;;  %v113_v42 = vld [vmem:[#allocation7 + $0xc0] sm:$0xff] }
  0x65   :  { %695 = vmatpush1.bf16.msra.mxu1 %v694_v26  ;;  %665 = vmatprep.subr.bf16.mxu0 %v664_v27  ;;  %v668_v40 = vpack.c.bf16 %v118_v37, %v114_v36  ;;  %v117_v43 = vld [vmem:[#allocation7 + $0xe0] sm:$0xff]  ;;  %v700_v44 = vpack.c.bf16 %v120_v41, %v116_v38  ;;  %v115_v45 = vld [vmem:[#allocation7 + $0xd0] sm:$0xff]  ;;  %v122_v47 = vld [vmem:[#allocation7 + $0x108] sm:$0xff] }
  0x66   :  { %697 = vmatprep.subr.bf16.mxu1 %v696_v31  ;;  %v119_v46 = vld [vmem:[#allocation7 + $0xf0] sm:$0xff]  ;;  %v126_v48 = vld [vmem:[#allocation7 + $0x128] sm:$0xff]  ;;  %v124_v49 = vld [vmem:[#allocation7 + $0x118] sm:$0xff]  ;;  %v670_v51 = vpack.c.bf16 %v117_v43, %v113_v42 }
  0x67   :  { %v128_v50 = vld [vmem:[#allocation7 + $0x138] sm:$0xff]  ;;  %v702_v52 = vpack.c.bf16 %v119_v46, %v115_v45  ;;  %v672_v53 = vpack.c.bf16 %v126_v48, %v122_v47  ;;  %v121_v54 = vld [vmem:[#allocation7 + $0x100] sm:$0xff]  ;;  %v123_v56 = vld [vmem:[#allocation7 + $0x110] sm:$0xff] }
  0x68   :  { %667 = vmatpush1.bf16.msra.mxu0 %v666_v35  ;;  %v125_v55 = vld [vmem:[#allocation7 + $0x120] sm:$0xff]  ;;  %v704_v57 = vpack.c.bf16 %v128_v50, %v124_v49  ;;  %v127_v58 = vld [vmem:[#allocation7 + $0x130] sm:$0xff]  ;;  %v130_v59 = vld [vmem:[#allocation7 + $0x148] sm:$0xff] }
  0x69   :  { %699 = vmatpush1.bf16.msra.mxu1 %v698_v39  ;;  %669 = vmatprep.subr.bf16.mxu0 %v668_v40  ;;  %v134_v60 = vld [vmem:[#allocation7 + $0x168] sm:$0xff]  ;;  %v132_v61 = vld [vmem:[#allocation7 + $0x158] sm:$0xff]  ;;  %v674_v63 = vpack.c.bf16 %v125_v55, %v121_v54  ;;  %v706_v1 = vpack.c.bf16 %v127_v58, %v123_v56  ;;  %v129_v3 = vld [vmem:[#allocation7 + $0x140] sm:$0xff] }
  0x6a   :  { %701 = vmatprep.subr.bf16.mxu1 %v700_v44  ;;  %v136_v62 = vld [vmem:[#allocation7 + $0x178] sm:$0xff]  ;;  %v676_v2 = vpack.c.bf16 %v134_v60, %v130_v59  ;;  %v133_v4 = vld [vmem:[#allocation7 + $0x160] sm:$0xff]  ;;  %v131_v5 = vld [vmem:[#allocation7 + $0x150] sm:$0xff] }
  0x6b   :  { %v708_v6 = vpack.c.bf16 %v136_v62, %v132_v61  ;;  %v135_v7 = vld [vmem:[#allocation7 + $0x170] sm:$0xff]  ;;  %v138_v8 = vld [vmem:[#allocation7 + $0x188] sm:$0xff]  ;;  %v140_v10 = vld [vmem:[#allocation7 + $0x198] sm:$0xff]  ;;  %v678_v12 = vpack.c.bf16 %v133_v4, %v129_v3 }
  0x6c   :  { %671 = vmatpush1.bf16.msra.mxu0 %v670_v51  ;;  %v142_v9 = vld [vmem:[#allocation7 + $0x1a8] sm:$0xff]  ;;  %v144_v11 = vld [vmem:[#allocation7 + $0x1b8] sm:$0xff]  ;;  %v710_v13 = vpack.c.bf16 %v135_v7, %v131_v5  ;;  %v137_v15 = vld [vmem:[#allocation7 + $0x180] sm:$0xff] }
  0x6d   :  { %703 = vmatpush1.bf16.msra.mxu1 %v702_v52  ;;  %673 = vmatprep.subr.bf16.mxu0 %v672_v53  ;;  %v680_v14 = vpack.c.bf16 %v142_v9, %v138_v8  ;;  %v141_v16 = vld [vmem:[#allocation7 + $0x1a0] sm:$0xff]  ;;  %v139_v17 = vld [vmem:[#allocation7 + $0x190] sm:$0xff]  ;;  %v712_v18 = vpack.c.bf16 %v144_v11, %v140_v10  ;;  %v146_v20 = vld [vmem:[#allocation7 + $0x1c8] sm:$0xff] }
  0x6e   :  { %705 = vmatprep.subr.bf16.mxu1 %v704_v57  ;;  %v143_v19 = vld [vmem:[#allocation7 + $0x1b0] sm:$0xff]  ;;  %v150_v21 = vld [vmem:[#allocation7 + $0x1e8] sm:$0xff]  ;;  %v148_v22 = vld [vmem:[#allocation7 + $0x1d8] sm:$0xff]  ;;  %v682_v24 = vpack.c.bf16 %v141_v16, %v137_v15 }
  0x6f   :  { %v152_v23 = vld [vmem:[#allocation7 + $0x1f8] sm:$0xff]  ;;  %v714_v25 = vpack.c.bf16 %v143_v19, %v139_v17  ;;  %v684_v26 = vpack.c.bf16 %v150_v21, %v146_v20  ;;  %v145_v27 = vld [vmem:[#allocation7 + $0x1c0] sm:$0xff]  ;;  %v147_v29 = vld [vmem:[#allocation7 + $0x1d0] sm:$0xff] }
  0x70   :  { %675 = vmatpush1.bf16.msra.mxu0 %v674_v63  ;;  %v149_v28 = vld [vmem:[#allocation7 + $0x1e0] sm:$0xff]  ;;  %v716_v30 = vpack.c.bf16 %v152_v23, %v148_v22  ;;  %v151_v31 = vld [vmem:[#allocation7 + $0x1f0] sm:$0xff]  ;;  %v88_v59 = vld [vmem:[#allocation4 + $0x8] sm:$0xff] }
  0x71   :  { %707 = vmatpush1.bf16.msra.mxu1 %v706_v1  ;;  %677 = vmatprep.subr.bf16.mxu0 %v676_v2  ;;  %v353_v32 = vld [vmem:[#allocation10 + $0x80] sm:$0xff]  ;;  %v354_v33 = vld [vmem:[#allocation10 + $0x88] sm:$0xff]  ;;  %v686_v36 = vpack.c.bf16 %v149_v28, %v145_v27  ;;  %v718_v37 = vpack.c.bf16 %v151_v31, %v147_v29  ;;  %v355_v44 = vld [vmem:[#allocation10 + $0x90] sm:$0xff] }
  0x72   :  { %709 = vmatprep.subr.bf16.mxu1 %v708_v6  ;;  %v385_v34 = vld [vmem:[#allocation10 + $0x180] sm:$0xff]  ;;  %v386_v35 = vld [vmem:[#allocation10 + $0x188] sm:$0xff]  ;;  %v720_v38 = vpack.c.bf16 %v354_v33, %v353_v32  ;;  %v356_v45 = vld [vmem:[#allocation10 + $0x98] sm:$0xff] }
  0x73   :  { %v752_v39 = vpack.c.bf16 %v386_v35, %v385_v34  ;;  %v337_v40 = vld [vmem:[#allocation10] sm:$0xff]  ;;  %v338_v41 = vld [vmem:[#allocation10 + $0x8] sm:$0xff]  ;;  %v387_v47 = vld [vmem:[#allocation10 + $0x190] sm:$0xff]  ;;  %v724_v51 = vpack.c.bf16 %v356_v45, %v355_v44 }
  0x74   :  { %679 = vmatpush1.bf16.msra.mxu0 %v678_v12  ;;  %v369_v42 = vld [vmem:[#allocation10 + $0x100] sm:$0xff]  ;;  %v370_v43 = vld [vmem:[#allocation10 + $0x108] sm:$0xff]  ;;  %v388_v48 = vld [vmem:[#allocation10 + $0x198] sm:$0xff]  ;;  %v722_v49 = vpack.c.bf16 %v338_v41, %v337_v40 }
  0x75   :  { %711 = vmatpush1.bf16.msra.mxu1 %v710_v13  ;;  %681 = vmatprep.subr.bf16.mxu0 %v680_v14  ;;  %v87_v46 = vld [vmem:[#allocation4] sm:$0xff]  ;;  %v754_v50 = vpack.c.bf16 %v370_v43, %v369_v42  ;;  %v340_v53 = vld [vmem:[#allocation10 + $0x18] sm:$0xff]  ;;  %v756_v55 = vpack.c.bf16 %v388_v48, %v387_v47  ;;  %v357_v57 = vld [vmem:[#allocation10 + $0xa0] sm:$0xff] }
  0x76   :  { %713 = vmatprep.subr.bf16.mxu1 %v712_v18  ;;  %v339_v52 = vld [vmem:[#allocation10 + $0x10] sm:$0xff]  ;;  %v372_v56 = vld [vmem:[#allocation10 + $0x118] sm:$0xff]  ;;  %v358_v58 = vld [vmem:[#allocation10 + $0xa8] sm:$0xff] }
  0x77   :  { %v371_v54 = vld [vmem:[#allocation10 + $0x110] sm:$0xff]  ;;  %v389_v60 = vld [vmem:[#allocation10 + $0x1a0] sm:$0xff]  ;;  %v390_v61 = vld [vmem:[#allocation10 + $0x1a8] sm:$0xff]  ;;  %v726_v62 = vpack.c.bf16 %v340_v53, %v339_v52  ;;  %v728_v1 = vpack.c.bf16 %v358_v58, %v357_v57 }
  0x78   :  { %683 = vmatpush1.bf16.msra.mxu0 %v682_v24  ;;  %v758_v63 = vpack.c.bf16 %v372_v56, %v371_v54  ;;  %v341_v2 = vld [vmem:[#allocation10 + $0x20] sm:$0xff]  ;;  %v342_v3 = vld [vmem:[#allocation10 + $0x28] sm:$0xff]  ;;  %v760_v5 = vpack.c.bf16 %v390_v61, %v389_v60  ;;  %v359_v7 = vld [vmem:[#allocation10 + $0xb0] sm:$0xff] }
  0x79   :  { %715 = vmatpush1.bf16.msra.mxu1 %v714_v25  ;;  %685 = vmatprep.subr.bf16.mxu0 %v684_v26  ;;  %v373_v4 = vld [vmem:[#allocation10 + $0x120] sm:$0xff]  ;;  %v374_v6 = vld [vmem:[#allocation10 + $0x128] sm:$0xff]  ;;  %v360_v8 = vld [vmem:[#allocation10 + $0xb8] sm:$0xff] }
  0x7a   :  { %717 = vmatprep.subr.bf16.mxu1 %v716_v30  ;;  %v391_v9 = vld [vmem:[#allocation10 + $0x1b0] sm:$0xff]  ;;  %v392_v10 = vld [vmem:[#allocation10 + $0x1b8] sm:$0xff]  ;;  %v762_v11 = vpack.c.bf16 %v374_v6, %v373_v4  ;;  %v732_v12 = vpack.c.bf16 %v360_v8, %v359_v7  ;;  %v361_v18 = vld [vmem:[#allocation10 + $0xc0] sm:$0xff] }
  0x7b   :  { %v343_v13 = vld [vmem:[#allocation10 + $0x30] sm:$0xff]  ;;  %v344_v14 = vld [vmem:[#allocation10 + $0x38] sm:$0xff]  ;;  %v764_v16 = vpack.c.bf16 %v392_v10, %v391_v9  ;;  %v362_v19 = vld [vmem:[#allocation10 + $0xc8] sm:$0xff] }
  0x7c   :  { %687 = vmatpush1.bf16.msra.mxu0 %v686_v36  ;;  %v375_v15 = vld [vmem:[#allocation10 + $0x130] sm:$0xff]  ;;  %v376_v17 = vld [vmem:[#allocation10 + $0x138] sm:$0xff]  ;;  %v393_v20 = vld [vmem:[#allocation10 + $0x1c0] sm:$0xff]  ;;  %v734_v22 = vpack.c.bf16 %v344_v14, %v343_v13  ;;  %v736_v24 = vpack.c.bf16 %v362_v19, %v361_v18 }
  0x7d   :  { %719 = vmatpush1.bf16.msra.mxu1 %v718_v37  ;;  %721 = vmatprep.subr.bf16.mxu0 %v720_v38  ;;  %v394_v21 = vld [vmem:[#allocation10 + $0x1c8] sm:$0xff]  ;;  %v766_v23 = vpack.c.bf16 %v376_v17, %v375_v15  ;;  %v345_v25 = vld [vmem:[#allocation10 + $0x40] sm:$0xff]  ;;  %v363_v30 = vld [vmem:[#allocation10 + $0xd0] sm:$0xff] }
  0x7e   :  { %753 = vmatprep.subr.bf16.mxu1 %v752_v39  ;;  %v346_v26 = vld [vmem:[#allocation10 + $0x48] sm:$0xff]  ;;  %v377_v27 = vld [vmem:[#allocation10 + $0x140] sm:$0xff]  ;;  %v768_v28 = vpack.c.bf16 %v394_v21, %v393_v20  ;;  %v364_v31 = vld [vmem:[#allocation10 + $0xd8] sm:$0xff] }
  0x7f   :  { %240 = vmatmul.mubr.f32.vlgmr.msra.gmra.mrb[0].mxu0 %v87_v46  ;;  %v378_v29 = vld [vmem:[#allocation10 + $0x148] sm:$0xff]  ;;  %v395_v32 = vld [vmem:[#allocation10 + $0x1d0] sm:$0xff]  ;;  %v396_v33 = vld [vmem:[#allocation10 + $0x1d8] sm:$0xff]  ;;  %v738_v34 = vpack.c.bf16 %v346_v26, %v345_v25  ;;  %v740_v36 = vpack.c.bf16 %v364_v31, %v363_v30 }
  0x80   :  { %317 = vmatmul.mubr.f32.vlgmr.msra.gmra.mrb[0].mxu1 %v87_v46  ;;  %245 = vmatprep.mubr.f32.mxu0 %v944_v0  ;;  %v770_v35 = vpack.c.bf16 %v378_v29, %v377_v27  ;;  %v347_v37 = vld [vmem:[#allocation10 + $0x50] sm:$0xff]  ;;  %v348_v38 = vld [vmem:[#allocation10 + $0x58] sm:$0xff]  ;;  %v772_v40 = vpack.c.bf16 %v396_v33, %v395_v32  ;;  %v365_v42 = vld [vmem:[#allocation10 + $0xe0] sm:$0xff] }
  0x81   :  { %322 = vmatprep.mubr.f32.mxu1 %v944_v0  ;;  %723 = vmatpush3.bf16.msra.mxu0 %v722_v49  ;;  %v730_v0 = vpack.c.bf16 %v342_v3, %v341_v2  ;;  %v379_v39 = vld [vmem:[#allocation10 + $0x150] sm:$0xff]  ;;  %v380_v41 = vld [vmem:[#allocation10 + $0x158] sm:$0xff]  ;;  %v366_v43 = vld [vmem:[#allocation10 + $0xe8] sm:$0xff]  ;;  %v742_v46 = vpack.c.bf16 %v348_v38, %v347_v37 }
  0x82   :  { %755 = vmatpush3.bf16.msra.mxu1 %v754_v50  ;;  %725 = vmatprep.subr.bf16.mxu0 %v724_v51  ;;  %v397_v44 = vld [vmem:[#allocation10 + $0x1e0] sm:$0xff]  ;;  %v398_v45 = vld [vmem:[#allocation10 + $0x1e8] sm:$0xff]  ;;  %v774_v47 = vpack.c.bf16 %v380_v41, %v379_v39  ;;  %v744_v48 = vpack.c.bf16 %v366_v43, %v365_v42  ;;  %v367_v56 = vld [vmem:[#allocation10 + $0xf0] sm:$0xff] }
  0x83   :  { %246 = vmatmul.mubr.f32.gmra.mrb[2].mxu0 %v88_v59  ;;  %757 = vmatprep.subr.bf16.mxu1 %v756_v55  ;;  %v776_v49 = vpack.c.bf16 %v398_v45, %v397_v44  ;;  %v349_v50 = vld [vmem:[#allocation10 + $0x60] sm:$0xff]  ;;  %v350_v51 = vld [vmem:[#allocation10 + $0x68] sm:$0xff]  ;;  %v368_v57 = vld [vmem:[#allocation10 + $0xf8] sm:$0xff] }
  0x84   :  { %323 = vmatmul.mubr.f32.gmra.mrb[2].mxu1 %v88_v59  ;;  %v381_v52 = vld [vmem:[#allocation10 + $0x160] sm:$0xff]  ;;  %v746_v53 = vpack.c.bf16 %v350_v51, %v349_v50  ;;  %v382_v54 = vld [vmem:[#allocation10 + $0x168] sm:$0xff]  ;;  %v399_v58 = vld [vmem:[#allocation10 + $0x1f0] sm:$0xff]  ;;  %v748_v59 = vpack.c.bf16 %v368_v57, %v367_v56 }
  0x85   :  { %727 = vmatpush3.bf16.msra.mxu0 %v726_v62  ;;  %v778_v55 = vpack.c.bf16 %v382_v54, %v381_v52  ;;  %v400_v60 = vld [vmem:[#allocation10 + $0x1f8] sm:$0xff]  ;;  %v351_v61 = vld [vmem:[#allocation10 + $0x70] sm:$0xff]  ;;  %v579_v41 = vld [vmem:[#allocation12] ss:$0 sm:$0xff] }
  0x86   :  { %759 = vmatpush3.bf16.msra.mxu1 %v758_v63  ;;  %729 = vmatprep.subr.bf16.mxu0 %v728_v1  ;;  %v352_v62 = vld [vmem:[#allocation10 + $0x78] sm:$0xff]  ;;  %v780_v63 = vpack.c.bf16 %v400_v60, %v399_v58  ;;  %v383_v2 = vld [vmem:[#allocation10 + $0x170] sm:$0xff] }
  0x87   :  { %761 = vmatprep.subr.bf16.mxu1 %v760_v5  ;;  %v750_v1 = vpack.c.bf16 %v352_v62, %v351_v61  ;;  %v384_v3 = vld [vmem:[#allocation10 + $0x178] sm:$0xff]  ;;  %v155_v5 = vlaneseq }
  0x88   :  { %v782_v4 = vpack.c.bf16 %v384_v3, %v383_v2  ;;  %v153_v8 = vld [vmem:[#allocation9] sm:$0xf] }
  0x89   :  { %731 = vmatpush3.bf16.msra.mxu0 %v730_v0  ;;  %v156_v6 = vshrl.u32 %v155_v5, 7 }
  0x8a   :  { %763 = vmatpush3.bf16.msra.mxu1 %v762_v11  ;;  %733 = vmatprep.subr.bf16.mxu0 %v732_v12 }
  0x8b   :  { %765 = vmatprep.subr.bf16.mxu1 %v764_v16  ;;  %v157_v7 = vsub.s32 0, %v156_v6  ;;  %v165_v9 = vsub.s32 2, %v156_v6  ;;  %v161_v10 = vsub.s32 1, %v156_v6  ;;  %v169_v0 = vsub.s32 3, %v156_v6 }
  0x8d   :  { %735 = vmatpush3.bf16.msra.mxu0 %v734_v22  ;;  %v158_v11 = vrot.slane %v153_v8, %v157_v7  ;;  %v166_v12 = vrot.slane %v153_v8, %v165_v9  ;;  %v162_v13 = vrot.slane %v153_v8, %v161_v10  ;;  %v170_v14 = vrot.slane %v153_v8, %v169_v0 }
  0x8e   :  { %767 = vmatpush3.bf16.msra.mxu1 %v766_v23  ;;  %737 = vmatprep.subr.bf16.mxu0 %v736_v24 }
  0x8f   :  { %769 = vmatprep.subr.bf16.mxu1 %v768_v28 }
  0x91   :  { %739 = vmatpush3.bf16.msra.mxu0 %v738_v34 }
  0x92   :  { %771 = vmatpush3.bf16.msra.mxu1 %v770_v35  ;;  %741 = vmatprep.subr.bf16.mxu0 %v740_v36 }
  0x93   :  { %773 = vmatprep.subr.bf16.mxu1 %v772_v40 }
  0x95   :  { %743 = vmatpush3.bf16.msra.mxu0 %v742_v46 }
  0x96   :  { %775 = vmatpush3.bf16.msra.mxu1 %v774_v47  ;;  %745 = vmatprep.subr.bf16.mxu0 %v744_v48 }
  0x97   :  { %777 = vmatprep.subr.bf16.mxu1 %v776_v49 }
  0x99   :  { %747 = vmatpush3.bf16.msra.mxu0 %v746_v53 }
  0x9a   :  { %779 = vmatpush3.bf16.msra.mxu1 %v778_v55  ;;  %749 = vmatprep.subr.bf16.mxu0 %v748_v59 }
  0x9b   :  { %781 = vmatprep.subr.bf16.mxu1 %v780_v63 }
  0x9d   :  { %751 = vmatpush3.bf16.msra.mxu0 %v750_v1 }
  0x9e   :  { %783 = vmatpush3.bf16.msra.mxu1 %v782_v4 }
 0x152   :  { %v241_v15 = vpop.f32.mrb[0].mxu0 }
 0x153   :  { %v242_v16 = vadd.f32 %v241_v15, %v158_v11  ;;  %v318_v17 = vpop.f32.mrb[0].mxu1  ;;  %v243_v18 = vpop.f32.mrb[1].mxu0 }
 0x154   :  { %v319_v19 = vadd.f32 %v318_v17, %v166_v12  ;;  %v244_v20 = vadd.f32 %v243_v18, %v162_v13  ;;  %v320_v21 = vpop.f32.mrb[1].mxu1 }
 0x155   :  { %v321_v22 = vadd.f32 %v320_v21, %v170_v14  ;;  %v329_v26 = vmax.f32 %v242_v16, 0.0 }
 0x156   :  { %v331_v23 = vmax.f32 %v319_v19, 0.0  ;;  %v330_v24 = vmax.f32 %v244_v20, 0.0  ;;  %v247_v25 = vpop.f32.mrb[2].mxu0 }
 0x157   :  { %v332_v27 = vmax.f32 %v321_v22, 0.0  ;;  %v248_v28 = vadd.f32 %v247_v25, %v158_v11  ;;  %v324_v29 = vpop.f32.mrb[2].mxu1  ;;  %v249_v30 = vpop.f32.mrb[3].mxu0 }
 0x158   :  { %v325_v31 = vadd.f32 %v324_v29, %v166_v12  ;;  %v250_v32 = vadd.f32 %v249_v30, %v162_v13  ;;  %v326_v33 = vpop.f32.mrb[3].mxu1  ;;  %472 = vmatprep.mubr.f32.mxu0 %v330_v24 }
 0x159   :  { %v327_v34 = vadd.f32 %v326_v33, %v170_v14  ;;  %547 = vmatprep.mubr.f32.mxu1 %v332_v27  ;;  %473 = vmatmul.mubr.f32.vlgmr.msra.gmra.mrb[4].mxu0 %v329_v26  ;;  %v333_v37 = vmax.f32 %v248_v28, 0.0 }
 0x15a   :  { %v335_v35 = vmax.f32 %v325_v31, 0.0  ;;  %v334_v36 = vmax.f32 %v250_v32, 0.0  ;;  %548 = vmatmul.mubr.f32.vlgmr.msra.gmra.mrb[4].mxu1 %v331_v23 }
 0x15b   :  { %v336_v38 = vmax.f32 %v327_v34, 0.0 }
 0x15c   :  { %477 = vmatprep.mubr.f32.mxu0 %v334_v36 }
 0x15d   :  { %552 = vmatprep.mubr.f32.mxu1 %v336_v38  ;;  %478 = vmatmul.mubr.f32.gmra.mrb[6].mxu0 %v333_v37 }
 0x15e   :  { %553 = vmatmul.mubr.f32.gmra.mrb[6].mxu1 %v335_v35 }
 0x22c   :  { %v612_v39 = vpop.f32.mrb[4].mxu0 }
 0x22d   :  { %v650_v40 = vpop.f32.mrb[4].mxu1  ;;  %v613_v42 = vpop.f32.mrb[5].mxu0 }
 0x22e   :  { %v614_v43 = vadd.f32 %v613_v42, %v612_v39  ;;  %v651_v44 = vpop.f32.mrb[5].mxu1 }
 0x22f   :  { %v652_v45 = vadd.f32 %v651_v44, %v650_v40 }
 0x230   :  { %v475_v46 = vadd.f32 %v614_v43, %v579_v41  ;;  %v615_v47 = vpop.f32.mrb[6].mxu0 }
 0x231   :  { %v653_v48 = vpop.f32.mrb[6].mxu1  ;;  %v616_v49 = vpop.f32.mrb[7].mxu0 }
 0x232   :  { %v550_v50 = vadd.f32 %v652_v45, %v475_v46  ;;  %v617_v51 = vadd.f32 %v616_v49, %v615_v47  ;;  %v654_v52 = vpop.f32.mrb[7].mxu1 }
 0x233   :  { %v655_v53 = vadd.f32 %v654_v52, %v653_v48 }
 0x234   :  { %558 = vst [vmem:[#allocation13] sm:$0xff] %v550_v50  ;;  %v480_v54 = vadd.f32 %v617_v51, %v579_v41 }
 0x236   :  { %v555_v55 = vadd.f32 %v655_v53, %v480_v54 }
 0x238   :  { %559 = vst [vmem:[#allocation13 + $0x8] sm:$0xff] %v555_v55 }
 0x239   :  { %916 = shalt.err (!%p913_p2)
}
 0x23a   :  { %s917_s11 = scalar_lea.hbm %s1072_s6, 256 }
 0x23b   :  { %p918_p3 = scmp.ne.s32.totalorder %s1072_s6, %s917_s11  ;;  %p921_p4 = scmp.lt.u32.totalorder %s917_s11, %s1072_s6 }
 0x23d   :  { %p923_p5 = pnand %p921_p4, %p918_p3 }
 0x23f   :  { %926 = shalt.err (!%p923_p5)
}
 0x240   :  { %571 = dma.vmem_to_hbm [thread:$0]  %s566_s4, 256, %s1072_s6, [#allocation6], %s940_s0, %s940_s0, %s941_s21  }
 0x241   :  { %933 = dma.done.wait [#allocation6], 256  }
 0x242   :  { %934 = vsyncadd [#allocation6], 4294967040 }
 0x243   :  { %575 = vsyncpa [#allocation5], 1 }
 0x244   :  { %576 = vsyncpa [#allocation8], 1 }
 0x245   :  { %577 = vsyncpa [#allocation11], 1 }
 0x246   :  { %578 = vsyncpa [#allocation6], 1 }

</bundles_post_ra>
